<compile_context>
chip_gen: v7x
topology: tpu7x:2x2x1
jax: 0.10.0
libtpu: 0.0.40
codegen_flags: <defaults>
</compile_context>

<pallas_src>
import functools

import numpy as np
import jax
import jax.numpy as jnp
from jax.experimental import pallas as pl
from jax.experimental.pallas import tpu as pltpu

# ----------------------------- configuration ---------------------------------
B = 4                # batch
N = 8                # num_of_nodes
IN_DIM = 4           # in_dim
OUT_DIM = 8          # out_dim
K = 3                # K (number of propagation hops)
HIGRU_HID = 16       # TODO(synk): higru_hid & bandwidth are unused in the synthetic encoder.
HIGRU_OUT = 8
FEAT = 2 * HIGRU_OUT           # DAKGNN output feature dim (so 5*2*higru_out feeds Linear1)
NUM_VIEWS = 5
NUM_CLASSES = 5
PAD_CLASSES = 128              # lane-dense logits output width
TEMPERATURE = 0.5
SCALE = 0.1
BANDWIDTH = 2

VMEM = pltpu.MemorySpace.VMEM


# --------------------------- fused forward kernel ------------------------------
def fused_kernel(x_ref, t2_ref, bgc_ref, pproj_ref, bout_ref,
                 wall_ref, smask_ref, cmat_ref, gmat_ref, bpad_ref,
                 label_ref, rsel_ref, colm_ref, posm_ref,
                 out_ref, *, batch, num_classes, pad_classes, inv_temp, scale):
    f32 = jnp.float32
    neg = f32(-1e9)

    # ---- encoder: K-hop adaptive graph conv folded into ONE matmul ----
    s = jnp.dot(x_ref[...], t2_ref[...], preferred_element_type=f32) + bgc_ref[...]
    h = jnp.maximum(s, 0.0)                                               # (VB, N*OUT)
    feat = jnp.dot(h, pproj_ref[...],
                   preferred_element_type=f32) + bout_ref[...]            # (VB, FEAT)

    # ---- Linear1 on yy = per-sample concat of the 5 view features (3 tiny dots) ----
    u = jnp.dot(feat, wall_ref[...], preferred_element_type=f32) * smask_ref[...]   # (VB, V*NC)
    t = jnp.dot(u, cmat_ref[...], preferred_element_type=f32)                        # (VB, PAD)
    logits = jnp.dot(gmat_ref[...], t, preferred_element_type=f32) + bpad_ref[...]   # (B, PAD)

    # ---- cross-entropy over the first num_classes (real) columns ----
    cls = jax.lax.broadcasted_iota(jnp.int32, (batch, pad_classes), 1)
    validf = (cls < num_classes).astype(f32)
    lab = label_ref[...]                                                  # (B, 1) int32
    onehot = (cls == lab).astype(f32)
    lm = jnp.where(cls < num_classes, logits, neg)
    mrow = jnp.max(lm, axis=-1, keepdims=True)
    lse = mrow + jnp.log(jnp.sum(jnp.exp(lm - mrow) * validf, axis=-1, keepdims=True))
    correct = jnp.sum(logits * onehot, axis=-1, keepdims=True)
    loss1 = jnp.sum(lse - correct, axis=0, keepdims=True) * (1.0 / batch)  # (1,1)

    # ---- all 10 pairwise contrastive losses: one batched masked log-softmax ----
    sq = jnp.sum(feat * feat, axis=-1, keepdims=True)
    zn = feat * jax.lax.rsqrt(sq + 1e-12)
    gram = jnp.einsum('id,jd->ij', zn, zn,
                      preferred_element_type=f32) * inv_temp              # (VB, VB)
    gsel = jnp.dot(rsel_ref[...], gram, preferred_element_type=f32)       # (10*2B, VB)
    colm = colm_ref[...]                                                  # (10*2B, VB)
    posm = posm_ref[...]                                                  # (10*2B, VB)
    sm = jnp.where(colm > 0.0, gsel, neg)
    mr = jnp.max(sm, axis=-1, keepdims=True)
    lg = gsel - mr
    lse_p = jnp.log(jnp.sum(jnp.exp(lg) * colm, axis=-1, keepdims=True))
    log_prob = lg - lse_p
    pos_cnt = jnp.maximum(jnp.sum(posm, axis=-1, keepdims=True), 1.0)
    mean_lpp = (jnp.sum(posm * log_prob, axis=-1, keepdims=True)
                * pl.reciprocal(pos_cnt, approx=True))
    loss2 = -jnp.sum(mean_lpp, axis=0, keepdims=True) * (1.0 / (2 * batch))  # (1,1)

    total = loss1 + scale * loss2                                          # (1,1)

    # ---- single lane-dense output: logits in cols [0,NC), total loss at [0, NC] ----
    row = jax.lax.broadcasted_iota(jnp.int32, (batch, pad_classes), 0)
    loss_slot = ((row == 0) & (cls == num_classes)).astype(f32)
    out_ref[...] = logits + loss_slot * total


# ------------------------------ full forward -----------------------------------
@jax.jit
def mr_dakgnn_forward(d1, d2, d3, d4, a4, label, params):
    apow, wgc, bgc, wout, bout, w_lin, b_lin = params
    batch = a4.shape[0]
    V, NC, PAD = NUM_VIEWS, NUM_CLASSES, PAD_CLASSES
    vb = V * batch

    # ---- stack views batch-major in the reference concat order: (aa4, dd4, dd3, dd2, dd1) ----
    x5 = jnp.stack([a4, d4, d3, d2, d1], axis=1)                 # (B, V, N, IN)
    x_vb = x5.reshape(batch * V, N * IN_DIM)                     # (VB, N*IN), row = b*V + v

    # ---- fold encoder params: T2 = sum_k kron-style(apow_k, wgc_k); pool folded into wout ----
    t2 = jnp.einsum('knm,kio->mino', apow, wgc).reshape(N * IN_DIM, N * OUT_DIM)
    bgc_row = jnp.tile(bgc, (1, N))                              # (1, N*OUT)
    pproj = jnp.tile(wout, (N, 1)) * (1.0 / N)                   # (N*OUT, FEAT)

    # ---- fold Linear1 into mask + constant select matmuls (no in-kernel reshape) ----
    w_all = w_lin.reshape(V, FEAT, NC).transpose(1, 0, 2).reshape(FEAT, V * NC)      # (FEAT, V*NC)
    b_pad = jnp.zeros((1, PAD), jnp.float32).at[:, :NC].set(b_lin)                   # (1, PAD)
    s_np = ((np.arange(vb)[:, None] % V) ==
            (np.arange(V * NC)[None, :] // NC)).astype(np.float32)                   # (VB, V*NC)
    c_np = np.zeros((V * NC, PAD), np.float32)
    c_np[np.arange(V * NC), np.arange(V * NC) % NC] = 1.0                            # (V*NC, PAD)
    g_np = np.kron(np.eye(batch, dtype=np.float32), np.ones((1, V), np.float32))     # (B, VB)
    s_mask, c_mat, g_mat = jnp.asarray(s_np), jnp.asarray(c_np), jnp.asarray(g_np)

    # ---- pairwise-CL row selection + masks (10 pairs x 2B rows), built once ----
    views_np = np.arange(vb) % V
    pairs = [(i, j) for i in range(V) for j in range(i + 1, V)]
    sel_list, colm_list = [], []
    for (i, j) in pairs:
        in_pair = ((views_np == i) | (views_np == j))
        rows = np.nonzero(in_pair)[0]                                     # (2B,)
        cm = np.tile(in_pair.astype(np.float32)[None, :], (rows.shape[0], 1))
        cm[np.arange(rows.shape[0]), rows] = 0.0                          # exclude self
        sel_list.append(rows)
        colm_list.append(cm)
    sel_rows = np.concatenate(sel_list)                                   # (10*2B,)
    colm_np = np.concatenate(colm_list, axis=0)                           # (10*2B, VB)
    rsel_np = np.zeros((sel_rows.shape[0], vb), np.float32)
    rsel_np[np.arange(sel_rows.shape[0]), sel_rows] = 1.0
    rsel, colm = jnp.asarray(rsel_np), jnp.asarray(colm_np)

    lab_vb = jnp.repeat(label, V)                                         # (VB,) row labels
    lab_rows = lab_vb[sel_rows]                                           # (10*2B,)
    posm = colm * (lab_rows[:, None] == lab_vb[None, :]).astype(jnp.float32)
    label_col = label.reshape(batch, 1).astype(jnp.int32)

    kern = functools.partial(
        fused_kernel, batch=batch, num_classes=NC, pad_classes=PAD,
        inv_temp=1.0 / TEMPERATURE, scale=SCALE)

    out = pl.pallas_call(
        kern,
        out_shape=jax.ShapeDtypeStruct((batch, PAD), jnp.float32),
        in_specs=[pl.BlockSpec(memory_space=VMEM)] * 14,
        out_specs=pl.BlockSpec(memory_space=VMEM),
    )(x_vb, t2, bgc_row, pproj, bout, w_all, s_mask, c_mat, g_mat, b_pad,
      label_col, rsel, colm, posm)

    logits = out[:, :NC]
    loss = out[0, NC]
    return logits, loss


# --------------------------------- main -----------------------------------------
if __name__ == "__main__":
    key = jax.random.PRNGKey(0)
    keys = jax.random.split(key, 12)

    # deterministic parameter init (shapes implied by the module's __init__)
    e1 = jax.random.normal(keys[0], (N, 4), jnp.float32) * 0.5
    e2 = jax.random.normal(keys[1], (N, 4), jnp.float32) * 0.5
    adj = jax.nn.softmax(jax.nn.relu(e1 @ e2.T), axis=-1)                 # adaptive adjacency (N, N)
    apow_list = [jnp.eye(N, dtype=jnp.float32)]
    for _ in range(K - 1):
        apow_list.append(apow_list[-1] @ adj)
    apow = jnp.stack(apow_list, axis=0)                                   # (K, N, N)

    wgc = jax.random.normal(keys[2], (K, IN_DIM, OUT_DIM), jnp.float32) * 0.1
    bgc = jnp.zeros((1, OUT_DIM), jnp.float32)
    wout = jax.random.normal(keys[3], (OUT_DIM, FEAT), jnp.float32) * 0.1
    bout = jnp.zeros((1, FEAT), jnp.float32)
    w_lin = jax.random.normal(keys[4], (5 * FEAT, NUM_CLASSES), jnp.float32) * 0.1
    b_lin = jnp.zeros((1, NUM_CLASSES), jnp.float32)
    params = (apow, wgc, bgc, wout, bout, w_lin, b_lin)

    # deterministic example inputs
    d1 = jax.random.normal(keys[5], (B, N, IN_DIM), jnp.float32)
    d2 = jax.random.normal(keys[6], (B, N, IN_DIM), jnp.float32)
    d3 = jax.random.normal(keys[7], (B, N, IN_DIM), jnp.float32)
    d4 = jax.random.normal(keys[8], (B, N, IN_DIM), jnp.float32)
    a4 = jax.random.normal(keys[9], (B, N, IN_DIM), jnp.float32)
    label = jax.random.randint(keys[10], (B,), 0, NUM_CLASSES, dtype=jnp.int32)

    result, loss = mr_dakgnn_forward(d1, d2, d3, d4, a4, label, params)
    jax.block_until_ready(result)
    jax.block_until_ready(loss)
    assert result.shape == (B, NUM_CLASSES)
    assert loss.shape == ()
    print("KERNEL_OK")
</pallas_src>

<mosaic_0001>
module attributes {stable_mosaic.version = 11 : i64} {
  func.func @fused_kernel(%arg0: memref<20x32xf32, #tpu.memory_space<vmem>>, %arg1: memref<32x64xf32, #tpu.memory_space<vmem>>, %arg2: memref<1x64xf32, #tpu.memory_space<vmem>>, %arg3: memref<64x16xf32, #tpu.memory_space<vmem>>, %arg4: memref<1x16xf32, #tpu.memory_space<vmem>>, %arg5: memref<16x25xf32, #tpu.memory_space<vmem>>, %arg6: memref<20x25xf32, #tpu.memory_space<vmem>>, %arg7: memref<25x128xf32, #tpu.memory_space<vmem>>, %arg8: memref<4x20xf32, #tpu.memory_space<vmem>>, %arg9: memref<1x128xf32, #tpu.memory_space<vmem>>, %arg10: memref<4x1xi32, #tpu.memory_space<vmem>>, %arg11: memref<80x20xf32, #tpu.memory_space<vmem>>, %arg12: memref<80x20xf32, #tpu.memory_space<vmem>>, %arg13: memref<80x20xf32, #tpu.memory_space<vmem>>, %arg14: memref<4x128xf32, #tpu.memory_space<vmem>>) attributes {dimension_semantics = [], scalar_prefetch = 0 : i64, scratch_operands = 0 : i64, tpu.core_type = #tpu.core_type<tc>} {
    %c0 = arith.constant 0 : index
    %c0_0 = arith.constant 0 : index
    %0 = vector.load %arg0[%c0, %c0_0] : memref<20x32xf32, #tpu.memory_space<vmem>>, vector<20x32xf32>
    %c0_1 = arith.constant 0 : index
    %c0_2 = arith.constant 0 : index
    %1 = vector.load %arg1[%c0_1, %c0_2] : memref<32x64xf32, #tpu.memory_space<vmem>>, vector<32x64xf32>
    %cst = arith.constant dense<0.000000e+00> : vector<20x64xf32>
    %2 = tpu.matmul %0, %1, %cst {dimension_numbers = #tpu.dot_dimension_numbers<[1], [0], [0], [1], [0, 0, 1, 1], [], []>} : vector<20x32xf32>, vector<32x64xf32>, vector<20x64xf32> -> vector<20x64xf32>
    %c0_3 = arith.constant 0 : index
    %c0_4 = arith.constant 0 : index
    %3 = vector.load %arg2[%c0_3, %c0_4] : memref<1x64xf32, #tpu.memory_space<vmem>>, vector<1x64xf32>
    %4 = vector.broadcast %3 : vector<1x64xf32> to vector<20x64xf32>
    %5 = arith.addf %2, %4 : vector<20x64xf32>
    %cst_5 = arith.constant 0.000000e+00 : f32
    %6 = vector.broadcast %cst_5 : f32 to vector<20x64xf32>
    %7 = arith.maximumf %5, %6 : vector<20x64xf32>
    %c0_6 = arith.constant 0 : index
    %c0_7 = arith.constant 0 : index
    %8 = vector.load %arg3[%c0_6, %c0_7] : memref<64x16xf32, #tpu.memory_space<vmem>>, vector<64x16xf32>
    %cst_8 = arith.constant dense<0.000000e+00> : vector<20x16xf32>
    %9 = tpu.matmul %7, %8, %cst_8 {dimension_numbers = #tpu.dot_dimension_numbers<[1], [0], [0], [1], [0, 0, 1, 1], [], []>} : vector<20x64xf32>, vector<64x16xf32>, vector<20x16xf32> -> vector<20x16xf32>
    %c0_9 = arith.constant 0 : index
    %c0_10 = arith.constant 0 : index
    %10 = vector.load %arg4[%c0_9, %c0_10] : memref<1x16xf32, #tpu.memory_space<vmem>>, vector<1x16xf32>
    %11 = vector.broadcast %10 : vector<1x16xf32> to vector<20x16xf32>
    %12 = arith.addf %9, %11 : vector<20x16xf32>
    %c0_11 = arith.constant 0 : index
    %c0_12 = arith.constant 0 : index
    %13 = vector.load %arg5[%c0_11, %c0_12] : memref<16x25xf32, #tpu.memory_space<vmem>>, vector<16x25xf32>
    %cst_13 = arith.constant dense<0.000000e+00> : vector<20x25xf32>
    %14 = tpu.matmul %12, %13, %cst_13 {dimension_numbers = #tpu.dot_dimension_numbers<[1], [0], [0], [1], [0, 0, 1, 1], [], []>} : vector<20x16xf32>, vector<16x25xf32>, vector<20x25xf32> -> vector<20x25xf32>
    %c0_14 = arith.constant 0 : index
    %c0_15 = arith.constant 0 : index
    %15 = vector.load %arg6[%c0_14, %c0_15] : memref<20x25xf32, #tpu.memory_space<vmem>>, vector<20x25xf32>
    %16 = arith.mulf %14, %15 : vector<20x25xf32>
    %c0_16 = arith.constant 0 : index
    %c0_17 = arith.constant 0 : index
    %17 = vector.load %arg7[%c0_16, %c0_17] : memref<25x128xf32, #tpu.memory_space<vmem>>, vector<25x128xf32>
    %cst_18 = arith.constant dense<0.000000e+00> : vector<20x128xf32>
    %18 = tpu.matmul %16, %17, %cst_18 {dimension_numbers = #tpu.dot_dimension_numbers<[1], [0], [0], [1], [0, 0, 1, 1], [], []>} : vector<20x25xf32>, vector<25x128xf32>, vector<20x128xf32> -> vector<20x128xf32>
    %c0_19 = arith.constant 0 : index
    %c0_20 = arith.constant 0 : index
    %19 = vector.load %arg8[%c0_19, %c0_20] : memref<4x20xf32, #tpu.memory_space<vmem>>, vector<4x20xf32>
    %cst_21 = arith.constant dense<0.000000e+00> : vector<4x128xf32>
    %20 = tpu.matmul %19, %18, %cst_21 {dimension_numbers = #tpu.dot_dimension_numbers<[1], [0], [0], [1], [0, 0, 1, 1], [], []>} : vector<4x20xf32>, vector<20x128xf32>, vector<4x128xf32> -> vector<4x128xf32>
    %c0_22 = arith.constant 0 : index
    %c0_23 = arith.constant 0 : index
    %21 = vector.load %arg9[%c0_22, %c0_23] : memref<1x128xf32, #tpu.memory_space<vmem>>, vector<1x128xf32>
    %22 = vector.broadcast %21 : vector<1x128xf32> to vector<4x128xf32>
    %23 = arith.addf %20, %22 : vector<4x128xf32>
    %24 = tpu.iota {dimensions = array<i32: 1>} : vector<4x128xi32>
    %c5_i32 = arith.constant 5 : i32
    %25 = vector.broadcast %c5_i32 : i32 to vector<4x128xi32>
    %26 = arith.cmpi slt, %24, %25 : vector<4x128xi32>
    %27 = arith.extui %26 : vector<4x128xi1> to vector<4x128xi32>
    %28 = arith.sitofp %27 : vector<4x128xi32> to vector<4x128xf32>
    %c0_24 = arith.constant 0 : index
    %c0_25 = arith.constant 0 : index
    %29 = vector.load %arg10[%c0_24, %c0_25] : memref<4x1xi32, #tpu.memory_space<vmem>>, vector<4x1xi32>
    %30 = vector.broadcast %29 : vector<4x1xi32> to vector<4x128xi32>
    %31 = arith.cmpi eq, %24, %30 : vector<4x128xi32>
    %32 = arith.extui %31 : vector<4x128xi1> to vector<4x128xi32>
    %33 = arith.sitofp %32 : vector<4x128xi32> to vector<4x128xf32>
    %c5_i32_26 = arith.constant 5 : i32
    %34 = vector.broadcast %c5_i32_26 : i32 to vector<4x128xi32>
    %35 = arith.cmpi slt, %24, %34 : vector<4x128xi32>
    %cst_27 = arith.constant -1.000000e+09 : f32
    %36 = vector.broadcast %cst_27 : f32 to vector<4x128xf32>
    %37 = arith.select %35, %23, %36 : vector<4x128xi1>, vector<4x128xf32>
    %cst_28 = arith.constant dense<0xFF800000> : vector<4xf32>
    %38 = vector.multi_reduction <maximumf>, %37, %cst_28 [1] : vector<4x128xf32> to vector<4xf32>
    %39 = vector.shape_cast %38 : vector<4xf32> to vector<4x1xf32>
    %40 = vector.broadcast %39 : vector<4x1xf32> to vector<4x128xf32>
    %41 = arith.subf %37, %40 : vector<4x128xf32>
    %42 = math.exp %41 : vector<4x128xf32>
    %43 = arith.mulf %42, %28 : vector<4x128xf32>
    %cst_29 = arith.constant dense<0.000000e+00> : vector<4xf32>
    %44 = vector.multi_reduction <add>, %43, %cst_29 [1] : vector<4x128xf32> to vector<4xf32>
    %45 = vector.shape_cast %44 : vector<4xf32> to vector<4x1xf32>
    %46 = math.log %45 : vector<4x1xf32>
    %47 = arith.addf %39, %46 : vector<4x1xf32>
    %48 = arith.mulf %23, %33 : vector<4x128xf32>
    %cst_30 = arith.constant dense<0.000000e+00> : vector<4xf32>
    %49 = vector.multi_reduction <add>, %48, %cst_30 [1] : vector<4x128xf32> to vector<4xf32>
    %50 = vector.shape_cast %49 : vector<4xf32> to vector<4x1xf32>
    %51 = arith.subf %47, %50 : vector<4x1xf32>
    %cst_31 = arith.constant dense<0.000000e+00> : vector<1xf32>
    %52 = vector.multi_reduction <add>, %51, %cst_31 [0] : vector<4x1xf32> to vector<1xf32>
    %53 = vector.shape_cast %52 : vector<1xf32> to vector<1x1xf32>
    %cst_32 = arith.constant 2.500000e-01 : f32
    %54 = vector.broadcast %cst_32 : f32 to vector<1x1xf32>
    %55 = arith.mulf %53, %54 : vector<1x1xf32>
    %56 = arith.mulf %12, %12 : vector<20x16xf32>
    %cst_33 = arith.constant dense<0.000000e+00> : vector<20xf32>
    %57 = vector.multi_reduction <add>, %56, %cst_33 [1] : vector<20x16xf32> to vector<20xf32>
    %58 = vector.shape_cast %57 : vector<20xf32> to vector<20x1xf32>
    %cst_34 = arith.constant 9.99999996E-13 : f32
    %59 = vector.broadcast %cst_34 : f32 to vector<20x1xf32>
    %60 = arith.addf %58, %59 : vector<20x1xf32>
    %61 = math.rsqrt %60 : vector<20x1xf32>
    %62 = vector.broadcast %61 : vector<20x1xf32> to vector<20x16xf32>
    %63 = arith.mulf %12, %62 : vector<20x16xf32>
    "tpu.trace_start"() <{level = 10 : i32, message = "id,jd->ij"}> : () -> ()
    %cst_35 = arith.constant dense<0.000000e+00> : vector<20x20xf32>
    %64 = tpu.matmul %63, %63, %cst_35 {dimension_numbers = #tpu.dot_dimension_numbers<[1], [1], [0], [0], [0, 0, 1, 0], [], []>} : vector<20x16xf32>, vector<20x16xf32>, vector<20x20xf32> -> vector<20x20xf32>
    "tpu.trace_stop"() : () -> ()
    %cst_36 = arith.constant 2.000000e+00 : f32
    %65 = vector.broadcast %cst_36 : f32 to vector<20x20xf32>
    %66 = arith.mulf %64, %65 : vector<20x20xf32>
    %c0_37 = arith.constant 0 : index
    %c0_38 = arith.constant 0 : index
    %67 = vector.load %arg11[%c0_37, %c0_38] : memref<80x20xf32, #tpu.memory_space<vmem>>, vector<80x20xf32>
    %cst_39 = arith.constant dense<0.000000e+00> : vector<80x20xf32>
    %68 = tpu.matmul %67, %66, %cst_39 {dimension_numbers = #tpu.dot_dimension_numbers<[1], [0], [0], [1], [0, 0, 1, 1], [], []>} : vector<80x20xf32>, vector<20x20xf32>, vector<80x20xf32> -> vector<80x20xf32>
    %c0_40 = arith.constant 0 : index
    %c0_41 = arith.constant 0 : index
    %69 = vector.load %arg12[%c0_40, %c0_41] : memref<80x20xf32, #tpu.memory_space<vmem>>, vector<80x20xf32>
    %c0_42 = arith.constant 0 : index
    %c0_43 = arith.constant 0 : index
    %70 = vector.load %arg13[%c0_42, %c0_43] : memref<80x20xf32, #tpu.memory_space<vmem>>, vector<80x20xf32>
    %cst_44 = arith.constant 0.000000e+00 : f32
    %71 = vector.broadcast %cst_44 : f32 to vector<80x20xf32>
    %72 = arith.cmpf ogt, %69, %71 : vector<80x20xf32>
    %cst_45 = arith.constant -1.000000e+09 : f32
    %73 = vector.broadcast %cst_45 : f32 to vector<80x20xf32>
    %74 = arith.select %72, %68, %73 : vector<80x20xi1>, vector<80x20xf32>
    %cst_46 = arith.constant dense<0xFF800000> : vector<80xf32>
    %75 = vector.multi_reduction <maximumf>, %74, %cst_46 [1] : vector<80x20xf32> to vector<80xf32>
    %76 = vector.shape_cast %75 : vector<80xf32> to vector<80x1xf32>
    %77 = vector.broadcast %76 : vector<80x1xf32> to vector<80x20xf32>
    %78 = arith.subf %68, %77 : vector<80x20xf32>
    %79 = math.exp %78 : vector<80x20xf32>
    %80 = arith.mulf %79, %69 : vector<80x20xf32>
    %cst_47 = arith.constant dense<0.000000e+00> : vector<80xf32>
    %81 = vector.multi_reduction <add>, %80, %cst_47 [1] : vector<80x20xf32> to vector<80xf32>
    %82 = vector.shape_cast %81 : vector<80xf32> to vector<80x1xf32>
    %83 = math.log %82 : vector<80x1xf32>
    %84 = vector.broadcast %83 : vector<80x1xf32> to vector<80x20xf32>
    %85 = arith.subf %78, %84 : vector<80x20xf32>
    %cst_48 = arith.constant dense<0.000000e+00> : vector<80xf32>
    %86 = vector.multi_reduction <add>, %70, %cst_48 [1] : vector<80x20xf32> to vector<80xf32>
    %87 = vector.shape_cast %86 : vector<80xf32> to vector<80x1xf32>
    %cst_49 = arith.constant 1.000000e+00 : f32
    %88 = vector.broadcast %cst_49 : f32 to vector<80x1xf32>
    %89 = arith.maximumf %87, %88 : vector<80x1xf32>
    %90 = arith.mulf %70, %85 : vector<80x20xf32>
    %cst_50 = arith.constant dense<0.000000e+00> : vector<80xf32>
    %91 = vector.multi_reduction <add>, %90, %cst_50 [1] : vector<80x20xf32> to vector<80xf32>
    %92 = vector.shape_cast %91 : vector<80xf32> to vector<80x1xf32>
    %93 = tpu.reciprocal %89 {approx = true} : vector<80x1xf32> -> vector<80x1xf32>
    %94 = arith.mulf %92, %93 : vector<80x1xf32>
    %cst_51 = arith.constant dense<0.000000e+00> : vector<1xf32>
    %95 = vector.multi_reduction <add>, %94, %cst_51 [0] : vector<80x1xf32> to vector<1xf32>
    %96 = vector.shape_cast %95 : vector<1xf32> to vector<1x1xf32>
    %cst_52 = arith.constant 0.000000e+00 : f32
    %97 = vector.broadcast %cst_52 : f32 to vector<1x1xf32>
    %98 = arith.subf %97, %96 : vector<1x1xf32>
    %cst_53 = arith.constant 1.250000e-01 : f32
    %99 = vector.broadcast %cst_53 : f32 to vector<1x1xf32>
    %100 = arith.mulf %98, %99 : vector<1x1xf32>
    %cst_54 = arith.constant 1.000000e-01 : f32
    %101 = vector.broadcast %cst_54 : f32 to vector<1x1xf32>
    %102 = arith.mulf %101, %100 : vector<1x1xf32>
    %103 = arith.addf %55, %102 : vector<1x1xf32>
    %104 = tpu.iota {dimensions = array<i32: 0>} : vector<4x128xi32>
    %c0_i32 = arith.constant 0 : i32
    %105 = vector.broadcast %c0_i32 : i32 to vector<4x128xi32>
    %106 = arith.cmpi eq, %104, %105 : vector<4x128xi32>
    %c5_i32_55 = arith.constant 5 : i32
    %107 = vector.broadcast %c5_i32_55 : i32 to vector<4x128xi32>
    %108 = arith.cmpi eq, %24, %107 : vector<4x128xi32>
    %109 = arith.andi %106, %108 : vector<4x128xi1>
    %110 = arith.extui %109 : vector<4x128xi1> to vector<4x128xi32>
    %111 = arith.sitofp %110 : vector<4x128xi32> to vector<4x128xf32>
    %112 = vector.broadcast %103 : vector<1x1xf32> to vector<4x128xf32>
    %113 = arith.mulf %111, %112 : vector<4x128xf32>
    %114 = arith.addf %23, %113 : vector<4x128xf32>
    %c0_56 = arith.constant 0 : index
    %c0_57 = arith.constant 0 : index
    %115 = vector.load %arg14[%c0_56, %c0_57] : memref<4x128xf32, #tpu.memory_space<vmem>>, vector<4x128xf32>
    tpu.vector_store %arg14[%c0_56, %c0_57], %114 {strides = array<i32>} : memref<4x128xf32, #tpu.memory_space<vmem>>, vector<4x128xf32>,
    return
  }
}

</mosaic_0001>

<bundles_post_ra>
// kernel: mr_dakgnn_forward.1
= control target key start
LH: loop header
LB: loop body
LE: loop exit
PB: predicated region body
PF: predicated region fallthrough
CT: control target
= control target key end

     0   :  { %v1478_v0 = vmov 0.0|0.0   ;;  %vm1479_vm0 = vmmov 0   ;;  %v1480_v4 = vmov 0.0   ;;  %vm61_vm1 = vcmask 261120   ;;  %s1989_s1 = inlined_call_operand.vmem [shape: f32[32,64], index: 1, kind: input, shape index: {}]   ;;  %s1990_s3 = inlined_call_operand.vmem [shape: f32[64,16], index: 3, kind: input, shape index: {}]   ;;  %s1991_s0 = inlined_call_operand.vmem [shape: f32[20,32], index: 0, kind: input, shape index: {}]   ;;  %s1992_s5 = inlined_call_operand.vmem [shape: f32[16,25], index: 5, kind: input, shape index: {}]   ;;  %s1993_s2 = inlined_call_operand.vmem [shape: f32[1,64], index: 2, kind: input, shape index: {}]   ;;  %s1994_s4 = inlined_call_operand.vmem [shape: f32[1,16], index: 4, kind: input, shape index: {}]   ;;  %s1995_s7 = inlined_call_operand.vmem [shape: f32[25,128], index: 7, kind: input, shape index: {}]   ;;  %s1996_s6 = inlined_call_operand.vmem [shape: f32[20,25], index: 6, kind: input, shape index: {}]   ;;  %s1997_s8 = inlined_call_operand.vmem [shape: f32[4,20], index: 8, kind: input, shape index: {}]   ;;  %s1998_s11 = inlined_call_operand.vmem [shape: f32[80,20], index: 11, kind: input, shape index: {}]   ;;  %s1999_s12 = inlined_call_operand.vmem [shape: f32[80,20], index: 12, kind: input, shape index: {}]   ;;  %s2000_s9 = inlined_call_operand.vmem [shape: f32[1,128], index: 9, kind: input, shape index: {}]   ;;  %s2001_s13 = inlined_call_operand.vmem [shape: f32[80,20], index: 13, kind: input, shape index: {}]   ;;  %s2002_s10 = inlined_call_operand.vmem [shape: s32[4,1], index: 10, kind: input, shape index: {}]   ;;  %s2003_s14 = inlined_call_operand.vmem [shape: f32[4,128], index: 14, kind: output, shape index: {}]  }
   0x1   :  { %1363 = vmatprep.subr.bf16.mxu0 %v1478_v0  ;;  %v50_v1 = vld [vmem:[%s1989_s1] sm:$0xff]  ;;  %v51_v2 = vld [vmem:[%s1989_s1 + $0x8] sm:$0xff]  ;;  %v52_v3 = vld [vmem:[%s1989_s1 + $0x10] sm:$0xff]  ;;  %1254 = vmatprep.mubr.msk.f32.mxu0 %vm1479_vm0, %v1480_v4  ;;  %vm169_vm2 = vcmask 523264   ;;  %vm261_vm3 = vcmask 130048   ;;  %vm589_vm4 = vcmask 125952  }
   0x2   :  { %v1364_v5 = vpack.c.bf16 %v51_v2, %v50_v1  ;;  %v53_v6 = vld [vmem:[%s1989_s1 + $0x18] sm:$0xff]  ;;  %1369 = vmatprep.subr.bf16.mxu1 %v1478_v0  ;;  %1279 = vmatprep.mubr.msk.f32.mxu1 %vm1479_vm0, %v1480_v4  ;;  %v154_v7 = vld [vmem:[%s1990_s3] sm:$0xff]  ;;  %v155_v8 = vld [vmem:[%s1990_s3 + $0x8] sm:$0xff]  ;;  %vm371_vm5 = vcmask 1040384   ;;  %vm1481_vm6 = vmmov 1   ;;  %vm361_vm8 = vcmask 203776  }
   0x3   :  { %v1367_v9 = vpack.c.bf16 %v53_v6, %v52_v3  ;;  %v1370_v10 = vpack.c.bf16 %v155_v8, %v154_v7  ;;  %v156_v11 = vld [vmem:[%s1990_s3 + $0x10] sm:$0xff]  ;;  %v157_v12 = vld [vmem:[%s1990_s3 + $0x18] sm:$0xff]  ;;  %v158_v14 = vld [vmem:[%s1990_s3 + $0x20] sm:$0xff]  ;;  %vm467_vm10 = vcmask 1043456   ;;  %vm463_vm11 = vcmask 162816  }
   0x4   :  { %1365 = vmatpush3.bf16.msra.mxu0 %v1364_v5  ;;  %v1373_v13 = vpack.c.bf16 %v157_v12, %v156_v11  ;;  %v159_v15 = vld [vmem:[%s1990_s3 + $0x28] sm:$0xff]  ;;  %v47_v16 = vld [vmem:[%s1991_s0] sm:$0xff]  ;;  %v49_v19 = vld [vmem:[%s1991_s0 + $0x10] sm:$0xf] }
   0x5   :  { %1366 = vmatprep.subr.bf16.mxu0 %v1478_v0  ;;  %1371 = vmatpush3.bf16.msra.mxu1 %v1370_v10  ;;  %v1376_v17 = vpack.c.bf16 %v159_v15, %v158_v14  ;;  %v48_v18 = vld [vmem:[%s1991_s0 + $0x8] sm:$0xff]  ;;  %v160_v20 = vld [vmem:[%s1990_s3 + $0x30] sm:$0xff]  ;;  %v161_v21 = vld [vmem:[%s1990_s3 + $0x38] sm:$0xff] }
   0x6   :  { %1372 = vmatprep.subr.bf16.mxu1 %v1478_v0  ;;  %v1379_v22 = vpack.c.bf16 %v161_v21, %v160_v20  ;;  %v259_v23 = vld [vmem:[%s1992_s5] sm:$0xff]  ;;  %v260_v24 = vld [vmem:[%s1992_s5 + $0x8] sm:$0xff]  ;;  %v359_v57 = vld [vmem:[%s1995_s7 + $0x10] sm:$0xff] }
   0x7   :  { %v1382_v25 = vpack.c.bf16 %v260_v24, %v259_v23  ;;  %v1155_v26 = vld [vmem:[%s1993_s2] ss:$0 sm:$0xff]  ;;  %v358_v56 = vld [vmem:[%s1995_s7 + $0x8] sm:$0xff]  ;;  %v360_v59 = vld [vmem:[%s1995_s7 + $0x18] sm:$0x1] }
   0x8   :  { %1368 = vmatpush3.bf16.msra.mxu0 %v1367_v9  ;;  %v1159_v39 = vld [vmem:[%s1994_s4] ss:$0 sm:$0xff]  ;;  %v1388_v60 = vpack.c.bf16 %v360_v59, %v359_v57  ;;  %vm1389_vm7 = vmpackc.low %vm371_vm5, %vm1481_vm6  ;;  %v1764_v57 = vld [vmem:[%s1999_s12 + $0x10] sm:$0xff] }
   0x9   :  { %1381 = vmatprep.subr.bf16.mxu0 %v1478_v0  ;;  %1374 = vmatpush3.bf16.msra.mxu1 %v1373_v13  ;;  %v357_v55 = vld [vmem:[%s1995_s7] sm:$0xff]  ;;  %vm1396_vm9 = vmpackc.low %vm261_vm3, %vm261_vm3  ;;  %v352_v13 = vld [vmem:[%s1996_s6 + $0x8] sm:$0xff]  ;;  %vm874_vm15 = vcmp.gt.f32.partialorder %v1764_v57, 0.0 }
   0xa   :  { %1375 = vmatprep.subr.bf16.mxu1 %v1478_v0  ;;  %v1385_v58 = vpack.c.bf16 %v358_v56, %v357_v55  ;;  %v351_v8 = vld [vmem:[%s1996_s6] sm:$0xff]  ;;  %v1759_v55 = vld [vmem:[%s1999_s12 + $0x18] sm:$0xff] }
   0xb   :  { %1255 = vmatmul.mubr.msk.f32.vlgmr.msra.gmra.mrb[0].mxu0 %vm61_vm1, %v47_v16  ;;  %vm875_vm14 = vcmp.gt.f32.partialorder %v1759_v55, 0.0 }
   0xc   :  { %1257 = vmatprep.mubr.msk.f32.mxu0 %vm1479_vm0, %v1480_v4  ;;  %1383 = vmatpush3.bf16.msra.mxu0 %v1382_v25 }
   0xd   :  { %1377 = vmatpush3.bf16.msra.mxu1 %v1376_v17  ;;  %1391 = vmatprep.subr.bf16.mxu0 %v1478_v0  ;;  %v353_v17 = vld [vmem:[%s1996_s6 + $0x10] sm:$0xf] }
   0xe   :  { %1378 = vmatprep.subr.bf16.mxu1 %v1478_v0 }
   0xf   :  { %1258 = vmatmul.mubr.msk.f32.gmra.mrb[2].mxu0 %vm61_vm1, %v48_v18 }
  0x10   :  { %1260 = vmatprep.mubr.msk.f32.mxu0 %vm1479_vm0, %v1480_v4 }
  0x11   :  { %1380 = vmatpush3.bf16.msra.mxu1 %v1379_v22 }
  0x12   :  { %1384 = vmatprep.subr.bf16.mxu1 %v1478_v0 }
  0x13   :  { %1261 = vmatmul.mubr.msk.f32.gmra.mrb[4].mxu0 %vm61_vm1, %v49_v19 }
  0x14   :  { %1292 = vmatprep.mubr.msk.f32.mxu0 %vm1479_vm0, %v1480_v4 }
  0xde   :  { %v137_v27 = vpop.f32.mrb[0].mxu0 }
  0xdf   :  { %v138_v28 = vadd.f32 %v1155_v26, %v137_v27  ;;  %v1256_v29 = vpop.f32.mrb[1].mxu0 }
  0xe1   :  { %v151_v30 = vmax.f32 %v138_v28, 0.0 }
  0xe2   :  { %v142_v31 = vpop.f32.mrb[2].mxu0 }
  0xe3   :  { %v143_v32 = vadd.f32 %v1155_v26, %v142_v31  ;;  %v1259_v33 = vpop.f32.mrb[3].mxu0  ;;  %1280 = vmatmul.mubr.msk.f32.vlgmr.msra.gmra.mrb[0].mxu1 %vm169_vm2, %v151_v30  ;;  %v455_v30 = vld [vmem:[%s1997_s8] sm:$0xf] }
  0xe4   :  { %1282 = vmatprep.mubr.msk.f32.mxu1 %vm1479_vm0, %v1480_v4  ;;  %1386 = vmatpush3.bf16.msra.mxu1 %v1385_v58  ;;  %v694_v31 = vld [vmem:[%s1998_s11] sm:$0xff] }
  0xe5   :  { %v152_v34 = vmax.f32 %v143_v32, 0.0  ;;  %1387 = vmatprep.subr.bf16.mxu1 %v1478_v0 }
  0xe6   :  { %v147_v35 = vpop.f32.mrb[4].mxu0 }
  0xe7   :  { %v148_v36 = vadd.f32 %v1155_v26, %v147_v35  ;;  %v1262_v37 = vpop.f32.mrb[5].mxu0  ;;  %1283 = vmatmul.mubr.msk.f32.gmra.mrb[2].mxu1 %vm169_vm2, %v152_v34 }
  0xe8   :  { %1285 = vmatprep.mubr.msk.f32.mxu1 %vm1479_vm0, %v1480_v4  ;;  %1390 = vmatpush3.bf16.msk.msra.mxu1 %vm1389_vm7, %v1388_v60 }
  0xe9   :  { %v153_v38 = vmax.f32 %v148_v36, 0.0  ;;  %1394 = vmatprep.subr.bf16.mxu1 %v1478_v0 }
  0xeb   :  { %1286 = vmatmul.mubr.msk.f32.gmra.mrb[4].mxu1 %vm169_vm2, %v153_v38 }
  0xec   :  { %1309 = vmatprep.mubr.msk.f32.mxu1 %vm1479_vm0, %v1480_v4 }
 0x1b6   :  { %v245_v40 = vpop.f32.mrb[0].mxu1 }
 0x1b7   :  { %v246_v41 = vadd.f32 %v1159_v39, %v245_v40  ;;  %v1281_v42 = vpop.f32.mrb[1].mxu1 }
 0x1b8   :  { %v695_v42 = vld [vmem:[%s1998_s11 + $0x8] sm:$0xff] }
 0x1b9   :  { %1293 = vmatmul.mubr.msk.f32.vlgmr.msra.gmra.mrb[6].mxu0 %vm261_vm3, %v246_v41  ;;  %v580_v43 = vmul.f32 %v246_v41, %v246_v41 }
 0x1ba   :  { %v250_v44 = vpop.f32.mrb[2].mxu1  ;;  %1295 = vmatprep.mubr.msk.f32.mxu0 %vm1479_vm0, %v1480_v4 }
 0x1bb   :  { %v251_v45 = vadd.f32 %v1159_v39, %v250_v44  ;;  %v1284_v46 = vpop.f32.mrb[3].mxu1  ;;  %v583_v47 = vsel %vm261_vm3, %v580_v43, 0.0  ;;  %v696_v43 = vld [vmem:[%s1998_s11 + $0x10] sm:$0xff]  ;;  %v697_v44 = vld [vmem:[%s1998_s11 + $0x18] sm:$0xff] }
 0x1bc   :  { %584 = vadd.xlane.f32.xlu0 %v583_v47  ;;  %v699_v46 = vld [vmem:[%s1998_s11 + $0x28] sm:$0xff]  ;;  %v700_v47 = vld [vmem:[%s1998_s11 + $0x30] sm:$0xff] }
 0x1bd   :  { %1296 = vmatmul.mubr.msk.f32.gmra.mrb[8].mxu0 %vm261_vm3, %v251_v45  ;;  %v581_v48 = vmul.f32 %v251_v45, %v251_v45 }
 0x1be   :  { %v255_v49 = vpop.f32.mrb[4].mxu1  ;;  %1298 = vmatprep.mubr.msk.f32.mxu0 %vm1479_vm0, %v1480_v4 }
 0x1bf   :  { %v256_v50 = vadd.f32 %v1159_v39, %v255_v49  ;;  %v1287_v51 = vpop.f32.mrb[5].mxu1  ;;  %v586_v52 = vsel %vm261_vm3, %v581_v48, 0.0  ;;  %v701_v48 = vld [vmem:[%s1998_s11 + $0x38] sm:$0xff]  ;;  %v702_v49 = vld [vmem:[%s1998_s11 + $0x40] sm:$0xff] }
 0x1c0   :  { %587 = vadd.xlane.f32.xlu0 %v586_v52 }
 0x1c1   :  { %1299 = vmatmul.mubr.msk.f32.gmra.mrb[10].mxu0 %vm261_vm3, %v256_v50  ;;  %v582_v53 = vmul.f32 %v256_v50, %v256_v50 }
 0x1c2   :  { %1324 = vmatprep.mubr.msk.f32.mxu0 %vm1479_vm0, %v1480_v4 }
 0x1c3   :  { %v590_v54 = vsel %vm589_vm4, %v582_v53, 0.0  ;;  %v1747_v53 = vld [vmem:[%s1999_s12 + $0x8] sm:$0xff] }
 0x1c4   :  { %591 = vadd.xlane.f32.xlu1 %v590_v54  ;;  %v1752_v54 = vld [vmem:[%s1999_s12] sm:$0xff]  ;;  %vm873_vm12 = vcmp.gt.f32.partialorder %v1747_v53, 0.0 }
 0x1c5   :  { %vm872_vm13 = vcmp.gt.f32.partialorder %v1752_v54, 0.0 }
 0x249   :  { %v585_v61 = vpop.xlane.xlu0 %584 }
 0x24a   :  { %v593_v1 = vadd.f32 1e-12, %v585_v61 }
 0x24d   :  { %v588_v62 = vpop.xlane.xlu0 %587 }
 0x24e   :  { %v594_v63 = vadd.f32 1e-12, %v588_v62 }
 0x250   :  { %1408 = vrsqrt.f32 %v594_v63  ;;  %v1773_v63 = vld [vmem:[%s1999_s12 + $0x28] sm:$0xff] }
 0x251   :  { %1410 = vrsqrt.f32 %v593_v1  ;;  %v592_v2 = vpop.xlane.xlu1 %591 }
 0x252   :  { %v595_v3 = vadd.f32 1e-12, %v592_v2  ;;  %v1778_v2 = vld [vmem:[%s1999_s12 + $0x20] sm:$0xff] }
 0x253   :  { %vm876_vm1 = vcmp.gt.f32.partialorder %v1778_v2, 0.0 }
 0x254   :  { %1412 = vrsqrt.f32 %v595_v3 }
 0x25a   :  { %v1409_v5 = vpop.eup %1408 }
 0x25b   :  { %v1411_v6 = vpop.eup %1410  ;;  %v600_v7 = vmul.f32 %v1409_v5, %v251_v45  ;;  %v698_v45 = vld [vmem:[%s1998_s11 + $0x20] sm:$0xff] }
 0x25c   :  { %v599_v9 = vmul.f32 %v1411_v6, %v246_v41 }
 0x25e   :  { %v1395_v12 = vpack.c.bf16 %v600_v7, %v599_v9  ;;  %v1413_v18 = vpop.eup %1412 }
 0x25f   :  { %v601_v22 = vmul.f32 %v1413_v18, %v256_v50  ;;  %v703_v50 = vld [vmem:[%s1998_s11 + $0x48] sm:$0xff]  ;;  %v1806_v18 = vld [vmem:[%s1999_s12 + $0x40] sm:$0xff] }
 0x260   :  { %vm880_vm5 = vcmp.gt.f32.partialorder %v1806_v18, 0.0 }
 0x28c   :  { %v337_v10 = vpop.f32.mrb[6].mxu0 }
 0x28d   :  { %v354_v0 = vmul.f32 %v351_v8, %v337_v10  ;;  %v1294_v11 = vpop.f32.mrb[7].mxu0 }
 0x28f   :  { %1310 = vmatmul.mubr.msk.f32.vlgmr.msra.gmra.mrb[6].mxu1 %vm361_vm8, %v354_v0  ;;  %v1792_v0 = vld [vmem:[%s1999_s12 + $0x30] sm:$0xff] }
 0x290   :  { %1397 = vmatpush3.bf16.xpose.msk.msra.mxu1 %vm1396_vm9, %v1395_v12  ;;  %v342_v14 = vpop.f32.mrb[8].mxu0  ;;  %1312 = vmatprep.mubr.msk.f32.mxu1 %vm1479_vm0, %v1480_v4 }
 0x291   :  { %v355_v15 = vmul.f32 %v352_v13, %v342_v14  ;;  %v1297_v16 = vpop.f32.mrb[9].mxu0  ;;  %1331 = vmatprep.subr.mxu1 %v1480_v4 }
 0x292   :  { %v1801_v16 = vld [vmem:[%s1999_s12 + $0x48] sm:$0xff] }
 0x293   :  { %1313 = vmatmul.mubr.msk.f32.gmra.mrb[8].mxu1 %vm361_vm8, %v355_v15  ;;  %vm881_vm4 = vcmp.gt.f32.partialorder %v1801_v16, 0.0 }
 0x294   :  { %v347_v19 = vpop.f32.mrb[10].mxu0  ;;  %1315 = vmatprep.mubr.msk.f32.mxu1 %vm1479_vm0, %v1480_v4 }
 0x295   :  { %v356_v20 = vmul.f32 %v353_v17, %v347_v19  ;;  %v1300_v21 = vpop.f32.mrb[11].mxu0 }
 0x297   :  { %1316 = vmatmul.mubr.msk.f32.gmra.mrb[10].mxu1 %vm361_vm8, %v356_v20 }
 0x298   :  { %1332 = vmatpush3.xpose.msk.msra.mxu1 %vm261_vm3, %v601_v22  ;;  %1333 = vmatprep.mubr.msk.f32.mxu1 %vm1479_vm0, %v1480_v4 }
 0x29b   :  { %1334 = vmatmul.mubr.msk.f32.vlgmr.msra.gmra.mrb[12].mxu1 %vm261_vm3, %v599_v9  ;;  %v1787_v9 = vld [vmem:[%s1999_s12 + $0x38] sm:$0xff] }
 0x29c   :  { %1336 = vmatprep.mubr.msk.f32.mxu1 %vm1479_vm0, %v1480_v4  ;;  %vm879_vm2 = vcmp.gt.f32.partialorder %v1787_v9, 0.0 }
 0x29f   :  { %1337 = vmatmul.mubr.msk.f32.gmra.mrb[14].mxu1 %vm261_vm3, %v600_v7 }
 0x2a0   :  { %1339 = vmatprep.mubr.msk.f32.mxu1 %vm1479_vm0, %v1480_v4  ;;  %vm877_vm0 = vcmp.gt.f32.partialorder %v1773_v63, 0.0 }
 0x2a3   :  { %1340 = vmatmul.mubr.msk.f32.gmra.mrb[16].mxu1 %vm261_vm3, %v601_v22  ;;  %vm878_vm3 = vcmp.gt.f32.partialorder %v1792_v0, 0.0 }
 0x362   :  { %v441_v23 = vpop.f32.mrb[6].mxu1 }
 0x363   :  { %v1311_v24 = vpop.f32.mrb[7].mxu1 }
 0x366   :  { %v446_v25 = vpop.f32.mrb[8].mxu1 }
 0x367   :  { %v1392_v26 = vpack.c.bf16 %v446_v25, %v441_v23  ;;  %v1314_v27 = vpop.f32.mrb[9].mxu1 }
 0x369   :  { %1393 = vmatpush3.bf16.msra.mxu0 %v1392_v26 }
 0x36a   :  { %v451_v28 = vpop.f32.mrb[10].mxu1  ;;  %1322 = vmatprep.subr.mxu0 %v1480_v4 }
 0x36b   :  { %v1317_v29 = vpop.f32.mrb[11].mxu1 }
 0x36d   :  { %1323 = vmatpush3.msk.msra.mxu0 %vm467_vm10, %v451_v28 }
 0x36e   :  { %v677_v32 = vpop.f32.mrb[12].mxu1  ;;  %1325 = vmatmul.mubr.msk.f32.vlgmr.msra.gmra.mrb[12].mxu0 %vm463_vm11, %v455_v30  ;;  %v1482_v30 = vmov 0  }
 0x36f   :  { %v1335_v33 = vpop.f32.mrb[13].mxu1  ;;  %1348 = vmatprep.mubr.msk.f32.mxu0 %vm463_vm11, %v694_v31  ;;  %v691_v35 = vmul.f32 2.0, %v677_v32  ;;  %1407 = vset.pattern.permute.xlu0 %v1482_v30 }
 0x372   :  { %v682_v34 = vpop.f32.mrb[14].mxu1 }
 0x373   :  { %v692_v36 = vmul.f32 2.0, %v682_v34  ;;  %v1338_v37 = vpop.f32.mrb[15].mxu1 }
 0x375   :  { %v1398_v38 = vpack.c.bf16 %v692_v36, %v691_v35 }
 0x376   :  { %v687_v39 = vpop.f32.mrb[16].mxu1 }
 0x377   :  { %v693_v40 = vmul.f32 2.0, %v687_v39  ;;  %v1341_v41 = vpop.f32.mrb[17].mxu1  ;;  %1399 = vmatprep.subr.bf16.mxu0 %v1398_v38 }
 0x378   :  { %1401 = vmatpush3.bf16.msra.mxu0 %v1398_v38 }
 0x379   :  { %1346 = vmatprep.subr.msk.mxu0 %vm467_vm10, %v693_v40 }
 0x37c   :  { %1347 = vmatpush3.msk.msra.mxu0 %vm467_vm10, %v693_v40 }
 0x37d   :  { %1349 = vmatmul.mubr.msk.f32.vlgmr.msra.gmra.mrb[14].mxu0 %vm463_vm11, %v695_v42 }
 0x37e   :  { %1351 = vmatprep.mubr.msk.f32.mxu0 %vm463_vm11, %v696_v43 }
 0x381   :  { %1352 = vmatmul.mubr.msk.f32.gmra.mrb[16].mxu0 %vm463_vm11, %v697_v44 }
 0x382   :  { %1354 = vmatprep.mubr.msk.f32.mxu0 %vm463_vm11, %v698_v45 }
 0x385   :  { %1355 = vmatmul.mubr.msk.f32.gmra.mrb[18].mxu0 %vm463_vm11, %v699_v46 }
 0x386   :  { %1357 = vmatprep.mubr.msk.f32.mxu0 %vm463_vm11, %v700_v47 }
 0x389   :  { %1358 = vmatmul.mubr.msk.f32.gmra.mrb[20].mxu0 %vm463_vm11, %v701_v48 }
 0x38a   :  { %1360 = vmatprep.mubr.msk.f32.mxu0 %vm463_vm11, %v702_v49 }
 0x38d   :  { %1361 = vmatmul.mubr.msk.f32.gmra.mrb[22].mxu0 %vm463_vm11, %v703_v50 }
 0x441   :  { %v1742_v51 = vpop.f32.mrb[12].mxu0 }
 0x442   :  { %v1326_v52 = vpop.f32.mrb[13].mxu0 }
 0x450   :  { %v1350_v56 = vpop.f32.mrb[14].mxu0 }
 0x451   :  { %v803_v58 = vpop.f32.mrb[15].mxu0  ;;  %v883_v59 = vsel %vm873_vm12, %v1350_v56, -1e+09 }
 0x452   :  { %v895_v60 = vsel %vm463_vm11, %v883_v59, -inf  ;;  %v882_v61 = vsel %vm872_vm13, %v803_v58, -1e+09 }
 0x453   :  { %896 = vmax.xlane.f32.xlu0 %v895_v60  ;;  %v892_v62 = vsel %vm463_vm11, %v882_v61, -inf }
 0x454   :  { %893 = vmax.xlane.f32.xlu1 %v892_v62  ;;  %v1353_v1 = vpop.f32.mrb[16].mxu0 }
 0x455   :  { %v813_v3 = vpop.f32.mrb[17].mxu0  ;;  %v885_v5 = vsel %vm875_vm14, %v1353_v1, -1e+09 }
 0x456   :  { %v901_v6 = vsel %vm463_vm11, %v885_v5, -inf  ;;  %v884_v7 = vsel %vm874_vm15, %v813_v3, -1e+09  ;;  %v1170_v5 = vld [vmem:[%s2000_s9] ss:$0 sm:$0xff] }
 0x457   :  { %902 = vmax.xlane.f32.xlu0 %v901_v6  ;;  %v898_v8 = vsel %vm463_vm11, %v884_v7, -inf }
 0x458   :  { %899 = vmax.xlane.f32.xlu1 %v898_v8  ;;  %v1356_v10 = vpop.f32.mrb[18].mxu0 }
 0x459   :  { %v823_v11 = vpop.f32.mrb[19].mxu0  ;;  %v887_v12 = vsel %vm877_vm0, %v1356_v10, -1e+09 }
 0x45a   :  { %v907_v13 = vsel %vm463_vm11, %v887_v12, -inf  ;;  %v886_v14 = vsel %vm876_vm1, %v823_v11, -1e+09 }
 0x45b   :  { %908 = vmax.xlane.f32.xlu0 %v907_v13  ;;  %v904_v15 = vsel %vm463_vm11, %v886_v14, -inf }
 0x45c   :  { %905 = vmax.xlane.f32.xlu1 %v904_v15  ;;  %v1359_v17 = vpop.f32.mrb[20].mxu0 }
 0x45d   :  { %v833_v19 = vpop.f32.mrb[21].mxu0  ;;  %v889_v20 = vsel %vm879_vm2, %v1359_v17, -1e+09 }
 0x45e   :  { %v913_v21 = vsel %vm463_vm11, %v889_v20, -inf  ;;  %v888_v22 = vsel %vm878_vm3, %v833_v19, -1e+09 }
 0x45f   :  { %914 = vmax.xlane.f32.xlu0 %v913_v21  ;;  %v910_v23 = vsel %vm463_vm11, %v888_v22, -inf }
 0x460   :  { %911 = vmax.xlane.f32.xlu1 %v910_v23  ;;  %v1362_v24 = vpop.f32.mrb[22].mxu0 }
 0x461   :  { %v843_v25 = vpop.f32.mrb[23].mxu0  ;;  %v891_v26 = vsel %vm881_vm4, %v1362_v24, -1e+09 }
 0x462   :  { %v890_v27 = vsel %vm880_vm5, %v843_v25, -1e+09  ;;  %v919_v28 = vsel %vm463_vm11, %v891_v26, -inf }
 0x463   :  { %920 = vmax.xlane.f32.xlu0 %v919_v28  ;;  %v916_v29 = vsel %vm463_vm11, %v890_v27, -inf }
 0x464   :  { %917 = vmax.xlane.f32.xlu1 %v916_v29 }
 0x4e0   :  { %v897_v31 = vpop.xlane.xlu0 %896 }
 0x4e1   :  { %v1814_v32 = vsub.f32 %v1350_v56, %v897_v31  ;;  %v894_v33 = vpop.xlane.xlu1 %893  ;;  %v541_v56 = vlaneseq }
 0x4e2   :  { %v1816_v34 = vsub.f32 %v803_v58, %v894_v33 }
 0x4e3   :  { %v934_v35 = vmul.f32 1.442695, %v1814_v32 }
 0x4e4   :  { %v932_v36 = vmul.f32 1.442695, %v1816_v34  ;;  %v903_v37 = vpop.xlane.xlu0 %902 }
 0x4e5   :  { %1414 = vpow2.f32 %v934_v35  ;;  %v1820_v38 = vsub.f32 %v1353_v1, %v903_v37  ;;  %v900_v39 = vpop.xlane.xlu1 %899 }
 0x4e6   :  { %1416 = vpow2.f32 %v932_v36  ;;  %v1822_v40 = vsub.f32 %v813_v3, %v900_v39 }
 0x4e7   :  { %v938_v41 = vmul.f32 1.442695, %v1820_v38 }
 0x4e8   :  { %v936_v42 = vmul.f32 1.442695, %v1822_v40  ;;  %v909_v43 = vpop.xlane.xlu0 %908 }
 0x4e9   :  { %1418 = vpow2.f32 %v938_v41  ;;  %v1826_v44 = vsub.f32 %v1356_v10, %v909_v43  ;;  %v906_v45 = vpop.xlane.xlu1 %905  ;;  %v1846_v10 = vand.u32 127, %v541_v56 }
 0x4ea   :  { %1420 = vpow2.f32 %v936_v42  ;;  %v1828_v46 = vsub.f32 %v823_v11, %v906_v45  ;;  %v1896_v45 = vld [vmem:[%s2001_s13 + $0x18] sm:$0xff] }
 0x4eb   :  { %v942_v47 = vmul.f32 1.442695, %v1826_v44  ;;  %vm543_vm6 = vcmp.lt.s32.totalorder %v1846_v10, 5  ;;  %vm1144_vm9 = vcmp.eq.s32.totalorder %v1846_v10, 5 }
 0x4ec   :  { %v940_v48 = vmul.f32 1.442695, %v1828_v46  ;;  %v915_v49 = vpop.xlane.xlu0 %914 }
 0x4ed   :  { %1422 = vpow2.f32 %v942_v47  ;;  %v1832_v50 = vsub.f32 %v1359_v17, %v915_v49  ;;  %v912_v52 = vpop.xlane.xlu1 %911  ;;  %v1854_v17 = vadd.f32 %v1170_v5, %v1742_v51  ;;  %v1031_v47 = vsel %vm463_vm11, %v1896_v45, 0.0  ;;  %v546_v49 = vld [vmem:[%s2002_s10] sm:$0xf] }
 0x4ee   :  { %1424 = vpow2.f32 %v940_v48  ;;  %v1834_v58 = vsub.f32 %v833_v19, %v912_v52  ;;  %v1903_v48 = vld [vmem:[%s2001_s13 + $0x20] sm:$0xff] }
 0x4ef   :  { %v1415_v59 = vpop.eup %1414  ;;  %v946_v60 = vmul.f32 1.442695, %v1832_v50  ;;  %v1865_v51 = vsel %vm543_vm6, %v1854_v17, -1e+09  ;;  %v1034_v52 = vsel %vm463_vm11, %v1903_v48, 0.0  ;;  %v1934_v5 = vld [vmem:[%s2001_s13 + $0x40] sm:$0xff] }
 0x4f0   :  { %v1417_v61 = vpop.eup %1416  ;;  %v944_v62 = vmul.f32 1.442695, %v1834_v58  ;;  %v921_v1 = vpop.xlane.xlu0 %920  ;;  %v953_v3 = vmul.f32 %v1415_v59, %v1747_v53  ;;  %v554_v26 = vsel %vm467_vm10, %v1865_v51, -inf  ;;  %v1913_v59 = vld [vmem:[%s2001_s13 + $0x28] sm:$0xff] }
 0x4f1   :  { %1426 = vpow2.f32 %v946_v60  ;;  %v1842_v6 = vsub.f32 %v1362_v24, %v921_v1  ;;  %v918_v7 = vpop.xlane.xlu1 %917  ;;  %v952_v8 = vmul.f32 %v1417_v61, %v1752_v54  ;;  %v1037_v60 = vsel %vm463_vm11, %v1913_v59, 0.0  ;;  %v1920_v61 = vld [vmem:[%s2001_s13 + $0x30] sm:$0xff]  ;;  %v1927_v1 = vld [vmem:[%s2001_s13 + $0x38] sm:$0xff] }
 0x4f2   :  { %1428 = vpow2.f32 %v944_v62  ;;  %v1848_v11 = vsub.f32 %v843_v25, %v918_v7  ;;  %v965_v12 = vsel %vm463_vm11, %v953_v3, 0.0  ;;  %v1040_v62 = vsel %vm463_vm11, %v1920_v61, 0.0 }
 0x4f3   :  { %v1419_v13 = vpop.eup %1418  ;;  %v950_v53 = vmul.f32 1.442695, %v1842_v6  ;;  %966 = vadd.xlane.f32.xlu0 %v965_v12  ;;  %v962_v14 = vsel %vm463_vm11, %v952_v8, 0.0  ;;  %v1043_v3 = vsel %vm463_vm11, %v1927_v1, 0.0  ;;  %v1046_v7 = vsel %vm463_vm11, %v1934_v5, 0.0 }
 0x4f4   :  { %v1421_v15 = vpop.eup %1420  ;;  %v948_v54 = vmul.f32 1.442695, %v1848_v11  ;;  %963 = vadd.xlane.f32.xlu1 %v962_v14  ;;  %v955_v19 = vmul.f32 %v1419_v13, %v1759_v55 }
 0x4f5   :  { %1430 = vpow2.f32 %v950_v53  ;;  %v954_v20 = vmul.f32 %v1421_v15, %v1764_v57 }
 0x4f6   :  { %1432 = vpow2.f32 %v948_v54  ;;  %v971_v21 = vsel %vm463_vm11, %v955_v19, 0.0 }
 0x4f7   :  { %v1423_v22 = vpop.eup %1422  ;;  %972 = vadd.xlane.f32.xlu0 %v971_v21  ;;  %v968_v23 = vsel %vm463_vm11, %v954_v20, 0.0 }
 0x4f8   :  { %v1425_v24 = vpop.eup %1424  ;;  %969 = vadd.xlane.f32.xlu1 %v968_v23  ;;  %v957_v27 = vmul.f32 %v1423_v22, %v1773_v63 }
 0x4f9   :  { %v956_v55 = vmul.f32 %v1425_v24, %v1778_v2 }
 0x4fa   :  { %v977_v33 = vsel %vm463_vm11, %v957_v27, 0.0 }
 0x4fb   :  { %v1427_v25 = vpop.eup %1426  ;;  %v974_v57 = vsel %vm463_vm11, %v956_v55, 0.0 }
 0x4fc   :  { %v1429_v28 = vpop.eup %1428  ;;  %975 = vadd.xlane.f32.xlu0 %v974_v57  ;;  %555 = vmax.xlane.f32.xlu1 %v554_v26  ;;  %v959_v2 = vmul.f32 %v1427_v25, %v1787_v9 }
 0x4fd   :  { %v958_v29 = vmul.f32 %v1429_v28, %v1792_v0  ;;  %v862_v0 = vld [vmem:[%s2001_s13] sm:$0xff] }
 0x4fe   :  { %v983_v37 = vsel %vm463_vm11, %v959_v2, 0.0  ;;  %v1022_v9 = vsel %vm463_vm11, %v862_v0, 0.0 }
 0x4ff   :  { %v1431_v30 = vpop.eup %1430  ;;  %v980_v31 = vsel %vm463_vm11, %v958_v29, 0.0 }
 0x500   :  { %v1433_v35 = vpop.eup %1432  ;;  %981 = vadd.xlane.f32.xlu0 %v980_v31  ;;  %978 = vadd.xlane.f32.xlu1 %v977_v33  ;;  %v961_v39 = vmul.f32 %v1431_v30, %v1801_v16  ;;  %v864_v16 = vld [vmem:[%s2001_s13 + $0x10] sm:$0xff] }
 0x501   :  { %v960_v36 = vmul.f32 %v1433_v35, %v1806_v18  ;;  %v863_v18 = vld [vmem:[%s2001_s13 + $0x8] sm:$0xff]  ;;  %v1028_v43 = vsel %vm463_vm11, %v864_v16, 0.0 }
 0x502   :  { %v989_v41 = vsel %vm463_vm11, %v961_v39, 0.0  ;;  %v1025_v42 = vsel %vm463_vm11, %v863_v18, 0.0 }
 0x503   :  { %v986_v63 = vsel %vm463_vm11, %v960_v36, 0.0 }
 0x504   :  { %984 = vadd.xlane.f32.xlu1 %v983_v37  ;;  %987 = vadd.xlane.f32.xlu0 %v986_v63 }
 0x508   :  { %990 = vadd.xlane.f32.xlu1 %v989_v41 }
 0x50c   :  { %1023 = vadd.xlane.f32.xlu1 %v1022_v9 }
 0x510   :  { %1026 = vadd.xlane.f32.xlu1 %v1025_v42 }
 0x514   :  { %1029 = vadd.xlane.f32.xlu1 %v1028_v43 }
 0x518   :  { %1032 = vadd.xlane.f32.xlu1 %v1031_v47 }
 0x51a   :  { %548 = vperm.xlu0 %1407, %v546_v49  }
 0x51c   :  { %1035 = vadd.xlane.f32.xlu1 %v1034_v52 }
 0x520   :  { %1038 = vadd.xlane.f32.xlu1 %v1037_v60 }
 0x524   :  { %1041 = vadd.xlane.f32.xlu1 %v1040_v62 }
 0x528   :  { %1044 = vadd.xlane.f32.xlu1 %v1043_v3 }
 0x52c   :  { %1047 = vadd.xlane.f32.xlu1 %v1046_v7 }
 0x580   :  { %v967_v8 = vpop.xlane.xlu0 %966 }
 0x581   :  { %1434 = vlog2.f32 %v967_v8  ;;  %v964_v12 = vpop.xlane.xlu1 %963 }
 0x582   :  { %1436 = vlog2.f32 %v964_v12 }
 0x584   :  { %v973_v13 = vpop.xlane.xlu0 %972 }
 0x585   :  { %1438 = vlog2.f32 %v973_v13  ;;  %v970_v53 = vpop.xlane.xlu1 %969 }
 0x586   :  { %1440 = vlog2.f32 %v970_v53 }
 0x589   :  { %v1938_v14 = vpop.xlane.xlu1 %555  ;;  %v976_v21 = vpop.xlane.xlu0 %975 }
 0x58a   :  { %v557_v15 = vsub.f32 %v1865_v51, %v1938_v14  ;;  %1442 = vlog2.f32 %v976_v21 }
 0x58b   :  { %v1435_v54 = vpop.eup %1434 }
 0x58c   :  { %v1437_v19 = vpop.eup %1436  ;;  %v995_v20 = vmul.f32 0.6931472, %v1435_v54  ;;  %v558_v23 = vmul.f32 1.442695, %v557_v15 }
 0x58d   :  { %v993_v22 = vmul.f32 0.6931472, %v1437_v19  ;;  %v979_v24 = vpop.xlane.xlu1 %978  ;;  %v982_v2 = vpop.xlane.xlu0 %981 }
 0x58e   :  { %v1013_v55 = vsub.f32 %v1814_v32, %v995_v20  ;;  %1444 = vlog2.f32 %v979_v24 }
 0x58f   :  { %v1439_v25 = vpop.eup %1438  ;;  %v1012_v57 = vsub.f32 %v1816_v34, %v993_v22  ;;  %1446 = vpow2.f32 %v558_v23  ;;  %v871_v34 = vld [vmem:[%s2001_s13 + $0x48] sm:$0xff] }
 0x590   :  { %v1441_v26 = vpop.eup %1440  ;;  %v1063_v27 = vmul.f32 %v1013_v55, %v863_v18  ;;  %v999_v51 = vmul.f32 0.6931472, %v1439_v25  ;;  %v1049_v39 = vsel %vm463_vm11, %v871_v34, 0.0 }
 0x591   :  { %v997_v28 = vmul.f32 0.6931472, %v1441_v26  ;;  %v985_v29 = vpop.xlane.xlu1 %984  ;;  %v1062_v31 = vmul.f32 %v1012_v57, %v862_v0  ;;  %v988_v41 = vpop.xlane.xlu0 %987 }
 0x592   :  { %v1075_v30 = vsel %vm463_vm11, %v1063_v27, 0.0  ;;  %1448 = vlog2.f32 %v985_v29  ;;  %v1015_v37 = vsub.f32 %v1820_v38, %v999_v51 }
 0x593   :  { %1076 = vadd.xlane.f32.xlu1 %v1075_v30  ;;  %v1014_v33 = vsub.f32 %v1822_v40, %v997_v28  ;;  %v1072_v36 = vsel %vm463_vm11, %v1062_v31, 0.0 }
 0x594   :  { %v1443_v40 = vpop.eup %1442  ;;  %v1065_v9 = vmul.f32 %v1015_v37, %v1896_v45 }
 0x595   :  { %v991_v32 = vpop.xlane.xlu1 %990  ;;  %v1064_v35 = vmul.f32 %v1014_v33, %v864_v16  ;;  %v1173_v16 = vsel %vm543_vm6, 1.0, %v1480_v4  ;;  %v1001_v38 = vmul.f32 0.6931472, %v1443_v40 }
 0x596   :  { %1450 = vlog2.f32 %v991_v32  ;;  %v1081_v43 = vsel %vm463_vm11, %v1065_v9, 0.0 }
 0x597   :  { %1073 = vadd.xlane.f32.xlu1 %v1072_v36  ;;  %v1078_v63 = vsel %vm463_vm11, %v1064_v35, 0.0  ;;  %1452 = vlog2.f32 %v982_v2  ;;  %v1016_v8 = vsub.f32 %v1828_v46, %v1001_v38 }
 0x598   :  { %1079 = vadd.xlane.f32.xlu0 %v1078_v63  ;;  %v1445_v0 = vpop.eup %1444  ;;  %1454 = vlog2.f32 %v988_v41 }
 0x599   :  { %v1447_v18 = vpop.eup %1446  ;;  %v1003_v42 = vmul.f32 0.6931472, %v1445_v0  ;;  %v549_v23 = vpop.permute.xlu0 %548 }
 0x59a   :  { %v560_v47 = vmul.f32 %v1447_v18, %v1173_v16  ;;  %vm550_vm7 = vcmp.eq.s32.totalorder %v1846_v10, %v549_v23 }
 0x59b   :  { %1050 = vadd.xlane.f32.xlu1 %v1049_v39  ;;  %v1017_v49 = vsub.f32 %v1826_v44, %v1003_v42  ;;  %v1066_v44 = vmul.f32 %v1016_v8, %v1903_v48  ;;  %v1174_v57 = vsel %vm550_vm7, 1.0, %v1480_v4 }
 0x59c   :  { %v1449_v52 = vpop.eup %1448  ;;  %v561_v45 = vsel %vm467_vm10, %v560_v47, 0.0 }
 0x59d   :  { %v1007_v3 = vmul.f32 0.6931472, %v1449_v52  ;;  %v1067_v7 = vmul.f32 %v1017_v49, %v1913_v59  ;;  %v1084_v46 = vsel %vm463_vm11, %v1066_v44, 0.0 }
 0x59f   :  { %1082 = vadd.xlane.f32.xlu1 %v1081_v43  ;;  %v1087_v54 = vsel %vm463_vm11, %v1067_v7, 0.0  ;;  %v1019_v19 = vsub.f32 %v1832_v50, %v1007_v3 }
 0x5a0   :  { %v1451_v60 = vpop.eup %1450 }
 0x5a1   :  { %v1011_v62 = vmul.f32 0.6931472, %v1451_v60  ;;  %v1453_v12 = vpop.eup %1452  ;;  %v1069_v22 = vmul.f32 %v1019_v19, %v1927_v1  ;;  %v567_v1 = vmul.f32 %v1174_v57, %v1854_v17 }
 0x5a2   :  { %v1005_v15 = vmul.f32 0.6931472, %v1453_v12  ;;  %v1455_v20 = vpop.eup %1454 }
 0x5a3   :  { %562 = vadd.xlane.f32.xlu1 %v561_v45  ;;  %v1021_v13 = vsub.f32 %v1842_v6, %v1011_v62  ;;  %v1009_v59 = vmul.f32 0.6931472, %v1455_v20  ;;  %v1093_v24 = vsel %vm463_vm11, %v1069_v22, 0.0  ;;  %v568_v26 = vsel %vm467_vm10, %v567_v1, 0.0 }
 0x5a4   :  { %v1018_v6 = vsub.f32 %v1834_v58, %v1005_v15 }
 0x5a5   :  { %v1071_v53 = vmul.f32 %v1021_v13, %v871_v34  ;;  %v1020_v50 = vsub.f32 %v1848_v11, %v1009_v59 }
 0x5a6   :  { %v1068_v48 = vmul.f32 %v1018_v6, %v1920_v61  ;;  %v1024_v61 = vpop.xlane.xlu1 %1023 }
 0x5a7   :  { %1088 = vadd.xlane.f32.xlu1 %v1087_v54  ;;  %v1099_v21 = vsel %vm463_vm11, %v1071_v53, 0.0  ;;  %v1070_v25 = vmul.f32 %v1020_v50, %v1934_v5  ;;  %v1052_v2 = vmax.f32 %v1024_v61, 1.0 }
 0x5a8   :  { %1100 = vadd.xlane.f32.xlu0 %v1099_v21  ;;  %v1090_v55 = vsel %vm463_vm11, %v1068_v48, 0.0 }
 0x5a9   :  { %v1096_v58 = vsel %vm463_vm11, %v1070_v25, 0.0  ;;  %1456 = vrcp.f32 %v1052_v2 }
 0x5aa   :  { %v1027_v11 = vpop.xlane.xlu1 %1026 }
 0x5ab   :  { %1085 = vadd.xlane.f32.xlu1 %v1084_v46  ;;  %v1053_v32 = vmax.f32 %v1027_v11, 1.0 }
 0x5ad   :  { %1458 = vrcp.f32 %v1053_v32 }
 0x5ae   :  { %v1030_v27 = vpop.xlane.xlu1 %1029 }
 0x5af   :  { %1094 = vadd.xlane.f32.xlu1 %v1093_v24  ;;  %v1054_v34 = vmax.f32 %v1030_v27, 1.0 }
 0x5b1   :  { %1460 = vrcp.f32 %v1054_v34 }
 0x5b2   :  { %v1033_v28 = vpop.xlane.xlu1 %1032 }
 0x5b3   :  { %1091 = vadd.xlane.f32.xlu1 %v1090_v55  ;;  %v1055_v36 = vmax.f32 %v1033_v28, 1.0  ;;  %v1457_v40 = vpop.eup %1456 }
 0x5b5   :  { %1462 = vrcp.f32 %v1055_v36  ;;  %v1142_v36 = vshrl.u32 %v541_v56, 7 }
 0x5b6   :  { %v1036_v29 = vpop.xlane.xlu1 %1035 }
 0x5b7   :  { %1097 = vadd.xlane.f32.xlu1 %v1096_v58  ;;  %v1056_v63 = vmax.f32 %v1036_v29, 1.0  ;;  %v1459_v42 = vpop.eup %1458  ;;  %vm1143_vm8 = vcmp.eq.s32.totalorder %v1142_v36, 0 }
 0x5b8   :  { %vm1145_vm11 = vmand %vm1143_vm8, %vm1144_vm9 }
 0x5b9   :  { %1464 = vrcp.f32 %v1056_v63 }
 0x5ba   :  { %v1039_v51 = vpop.xlane.xlu1 %1038 }
 0x5bb   :  { %569 = vadd.xlane.f32.xlu1 %v568_v26  ;;  %v1057_v0 = vmax.f32 %v1039_v51, 1.0  ;;  %v1461_v43 = vpop.eup %1460 }
 0x5bd   :  { %1466 = vrcp.f32 %v1057_v0 }
 0x5be   :  { %v1042_v30 = vpop.xlane.xlu1 %1041 }
 0x5bf   :  { %v1058_v9 = vmax.f32 %v1042_v30, 1.0  ;;  %v1463_v3 = vpop.eup %1462 }
 0x5c1   :  { %1468 = vrcp.f32 %v1058_v9 }
 0x5c2   :  { %v1045_v31 = vpop.xlane.xlu1 %1044 }
 0x5c3   :  { %v1059_v47 = vmax.f32 %v1045_v31, 1.0  ;;  %v1465_v8 = vpop.eup %1464 }
 0x5c6   :  { %v1048_v5 = vpop.xlane.xlu1 %1047 }
 0x5c7   :  { %v1060_v52 = vmax.f32 %v1048_v5, 1.0  ;;  %v1467_v19 = vpop.eup %1466 }
 0x5cb   :  { %v1469_v20 = vpop.eup %1468 }
 0x620   :  { %v1077_v33 = vpop.xlane.xlu1 %1076 }
 0x621   :  { %v1113_v38 = vmul.f32 %v1459_v42, %v1077_v33  ;;  %v1192_v42 = vsel %vm1145_vm11, 1.0, %v1480_v4 }
 0x624   :  { %v1074_v35 = vpop.xlane.xlu1 %1073 }
 0x625   :  { %v1112_v18 = vmul.f32 %v1457_v40, %v1074_v35  ;;  %v1080_v16 = vpop.xlane.xlu0 %1079 }
 0x626   :  { %v1114_v62 = vmul.f32 %v1461_v43, %v1080_v16 }
 0x627   :  { %v1122_v60 = vadd.f32 %v1113_v38, %v1112_v18 }
 0x628   :  { %v1051_v37 = vpop.xlane.xlu1 %1050 }
 0x629   :  { %v1061_v45 = vmax.f32 %v1051_v37, 1.0  ;;  %v1123_v13 = vadd.f32 %v1122_v60, %v1114_v62 }
 0x62c   :  { %v1083_v39 = vpop.xlane.xlu1 %1082 }
 0x62d   :  { %v1115_v7 = vmul.f32 %v1463_v3, %v1083_v39 }
 0x62f   :  { %v1124_v15 = vadd.f32 %v1123_v13, %v1115_v7 }
 0x630   :  { %v563_v41 = vpop.xlane.xlu1 %562 }
 0x631   :  { %1470 = vlog2.f32 %v563_v41 }
 0x632   :  { %1472 = vrcp.f32 %v1059_v47 }
 0x633   :  { %1474 = vrcp.f32 %v1060_v52 }
 0x634   :  { %v1089_v49 = vpop.xlane.xlu1 %1088  ;;  %1476 = vrcp.f32 %v1061_v45 }
 0x635   :  { %v1117_v21 = vmul.f32 %v1467_v19, %v1089_v49  ;;  %v1101_v57 = vpop.xlane.xlu0 %1100 }
 0x638   :  { %v1086_v12 = vpop.xlane.xlu1 %1085 }
 0x639   :  { %v1116_v53 = vmul.f32 %v1465_v8, %v1086_v12 }
 0x63b   :  { %v1125_v44 = vadd.f32 %v1124_v15, %v1116_v53  ;;  %v1471_v59 = vpop.eup %1470 }
 0x63c   :  { %v1095_v54 = vpop.xlane.xlu1 %1094  ;;  %v1473_v23 = vpop.eup %1472  ;;  %v565_v48 = vmul.f32 0.6931472, %v1471_v59 }
 0x63d   :  { %v1126_v22 = vadd.f32 %v1125_v44, %v1117_v21  ;;  %v1475_v24 = vpop.eup %1474  ;;  %v1119_v50 = vmul.f32 %v1473_v23, %v1095_v54 }
 0x63e   :  { %v1477_v25 = vpop.eup %1476  ;;  %v566_v27 = vadd.f32 %v565_v48, %v1938_v14 }
 0x63f   :  { %v1121_v61 = vmul.f32 %v1477_v25, %v1101_v57 }
 0x640   :  { %v1092_v46 = vpop.xlane.xlu1 %1091 }
 0x641   :  { %v1118_v6 = vmul.f32 %v1469_v20, %v1092_v46 }
 0x643   :  { %v1127_v55 = vadd.f32 %v1126_v22, %v1118_v6 }
 0x644   :  { %v1098_v58 = vpop.xlane.xlu1 %1097 }
 0x645   :  { %v1128_v1 = vadd.f32 %v1127_v55, %v1119_v50  ;;  %v1120_v26 = vmul.f32 %v1475_v24, %v1098_v58 }
 0x647   :  { %v1129_v11 = vadd.f32 %v1128_v1, %v1120_v26 }
 0x648   :  { %v570_v28 = vpop.xlane.xlu1 %569 }
 0x649   :  { %v1130_v29 = vadd.f32 %v1129_v11, %v1121_v61  ;;  %v571_v51 = vsub.f32 %v566_v27, %v570_v28 }
 0x64b   :  { %v1131_v30 = vrot.slane %v1130_v29, 4  ;;  %v572_v31 = vsel %vm467_vm10, %v571_v51, 0.0 }
 0x64c   :  { %v573_v5 = vrot.slane %v572_v31, 4 }
 0x64d   :  { %v1132_v33 = vadd.f32 %v1131_v30, %v1130_v29 }
 0x64e   :  { %v574_v2 = vadd.f32 %v573_v5, %v572_v31 }
 0x64f   :  { %v1133_v32 = vrot.slane %v1132_v33, 2 }
 0x650   :  { %v575_v35 = vrot.slane %v574_v2, 2 }
 0x651   :  { %v1134_v34 = vadd.f32 %v1133_v32, %v1132_v33 }
 0x652   :  { %v576_v37 = vadd.f32 %v575_v35, %v574_v2 }
 0x653   :  { %v1135_v63 = vrot.slane %v1134_v34, 1 }
 0x654   :  { %v577_v39 = vrot.slane %v576_v37, 1 }
 0x655   :  { %v1136_v40 = vadd.f32 %v1135_v63, %v1134_v34 }
 0x656   :  { %v578_v0 = vadd.f32 %v577_v39, %v576_v37 }
 0x657   :  { %v1137_v14 = vsub.f32 0.0, %v1136_v40 }
 0x658   :  { %v579_v18 = vmul.f32 0.25, %v578_v0 }
 0x659   :  { %v1138_v41 = vmul.f32 0.125, %v1137_v14 }
 0x65b   :  { %v1139_v9 = vmul.f32 0.1, %v1138_v41 }
 0x65d   :  { %v1140_v16 = vadd.f32 %v1139_v9, %v579_v18 }
 0x65f   :  { %v1148_v38 = vmul.f32 %v1192_v42, %v1140_v16 }
 0x661   :  { %v1149_v43 = vadd.f32 %v1148_v38, %v1854_v17 }
 0x663   :  { %1150 = vst [vmem:[%s2003_s14] sm:$0xf] %v1149_v43 }

</bundles_post_ra>
